<compile_context>
chip_gen: v5e
topology: v5e:2x2
jax: 0.10.0
libtpu: 0.0.40
codegen_flags: <defaults>
</compile_context>

<pallas_src>
import functools

import jax
import jax.numpy as jnp
from jax.experimental import pallas as pl
from jax.experimental.pallas import tpu as pltpu


def _round_up(x, m):
    return (x + m - 1) // m * m


def _fused_input_kernel(sidx_ref, num_ref, w_ref, out_ref, act_ref,
                        *, n_cate, n_num, bias_lane):
    """One batch tile of the fused InputModule forward.

    sidx_ref : [TB, n_cate]  int32  pre-shifted categorical indices
                                    (idx[:, f] + n_num + 1 + f*Vmax)
    num_ref  : [TB, n_num]   f32    numerical features (narrow, un-padded)
    w_ref    : [K_pad, D_pad] f32   fused weight:
                                      rows [0:n_num]      -> Linear W.T
                                      row  bias_lane      -> Linear bias
                                      rows [n_num+1+f*V..]-> emb table f
    out_ref  : [TB, D_pad]   f32    [cate embeddings | linear(num) | zero pad]
    act_ref  : [TB, K_pad]   f32    VMEM scratch activation slab
    """
    tb, k_pad = act_ref.shape

    # Hoisted loads / iota (shared by every compare).
    sidx = sidx_ref[...]                                            # [TB, n_cate]
    lane = jax.lax.broadcasted_iota(jnp.int32, (tb, k_pad), 1)      # [TB, K_pad]

    # Multi-hot (all categorical features + the always-hot bias lane) built
    # with boolean ORs and a single cast.
    hot = lane == bias_lane
    for f in range(n_cate):
        hot = jnp.logical_or(hot, lane == sidx[:, f:f + 1])

    # Activation slab: one full-width store, then a tiny masked store placing
    # the numerical features into lanes [0, n_num) (which `hot` left at 0).
    act_ref[...] = hot.astype(jnp.float32)
    act_ref[:, :n_num] = num_ref[...]

    # Single fused K=128 MXU matmul; single lane-dense full-width store.
    out_ref[...] = jnp.dot(act_ref[...], w_ref[...],
                           preferred_element_type=jnp.float32)


def build_fused_params(emb_tables, weight, bias):
    """Precompute (once, host/XLA side) the fused weight.

    emb_tables: [n_cate, Vmax, E] zero-padded stacked embedding tables
    weight    : [n_num, n_num]    torch-style Linear weight (out, in)
    bias      : [n_num]

    Returns (w_fused [K_pad, D_pad], bias_lane, cate_base).
    """
    n_cate, vmax, emb_dim = emb_tables.shape
    n_num = weight.shape[0]
    d_out = n_cate * emb_dim + n_num

    bias_lane = n_num                 # lane that is always 1.0
    cate_base = n_num + 1             # first lane of the one-hot section

    k_pad = max(128, _round_up(cate_base + n_cate * vmax, 128))
    d_pad = max(128, _round_up(d_out, 128))

    w_fused = jnp.zeros((k_pad, d_pad), jnp.float32)
    num_col0 = n_cate * emb_dim
    # Numerical Linear: rows [0:n_num] -> output cols [num_col0:num_col0+n_num]
    w_fused = w_fused.at[:n_num, num_col0:num_col0 + n_num].set(
        weight.T.astype(jnp.float32))
    # Bias folded into the always-hot lane's weight row.
    w_fused = w_fused.at[bias_lane, num_col0:num_col0 + n_num].set(
        bias.astype(jnp.float32))
    # Embedding tables on the block diagonal of the one-hot section.
    for f in range(n_cate):
        r0 = cate_base + f * vmax
        c0 = f * emb_dim
        w_fused = w_fused.at[r0:r0 + vmax, c0:c0 + emb_dim].set(
            emb_tables[f].astype(jnp.float32))
    return w_fused, bias_lane, cate_base


def input_module_forward(idx, emb_tables, num_x, weight, bias,
                         *, batch_tile=1024, trim=True):
    """Fused forward. weight is torch-style [out, in]; bias is [out].

    trim=True returns [B, d_out] (module semantics). trim=False returns the
    padded [b_pad, 128] slab to skip the extra output-slice HBM pass when the
    consumer can handle padded layout (padded rows/lanes are NOT zeroed).
    """
    B, n_cate = idx.shape
    _, vmax, emb_dim = emb_tables.shape
    n_num = num_x.shape[1]
    d_out = n_cate * emb_dim + n_num
    assert n_cate >= 1 and n_num >= 1  # demo config; module allows empty dicts
    # TODO(synk): n_cate == 0 / n_num == 0 degenerate cases fall back to caller.

    # Fused params (precompute once if weights are static).
    w_fused, bias_lane, cate_base = build_fused_params(emb_tables, weight, bias)
    k_pad, d_pad = w_fused.shape

    # Batch tiling: tile is a multiple of 8 (f32 sublane), capped at
    # ceil(B/2) rounded up so the grid has >= 2 steps whenever B > 8
    # (keeps both v7x TensorCores busy under dimension_semantics=parallel).
    half = -(-B // 2)
    tb = max(8, min(batch_tile, _round_up(half, 8)))
    b_pad = _round_up(B, tb)

    # Pre-shifted categorical indices: feature f's hot lane is
    # cate_base + f*vmax + idx[:, f].
    offsets = (cate_base + vmax * jnp.arange(n_cate, dtype=jnp.int32))[None, :]
    sidx = idx.astype(jnp.int32) + offsets                  # [B, n_cate]
    num_f = num_x.astype(jnp.float32)                       # [B, n_num] (narrow)

    if b_pad != B:
        sidx = jnp.zeros((b_pad, n_cate), jnp.int32).at[:B].set(sidx)
        num_f = jnp.zeros((b_pad, n_num), jnp.float32).at[:B].set(num_f)

    grid = (b_pad // tb,)
    kernel = functools.partial(_fused_input_kernel,
                               n_cate=n_cate, n_num=n_num, bias_lane=bias_lane)

    out_padded = pl.pallas_call(
        kernel,
        out_shape=jax.ShapeDtypeStruct((b_pad, d_pad), jnp.float32),
        grid_spec=pltpu.PrefetchScalarGridSpec(
            num_scalar_prefetch=0,
            grid=grid,
            in_specs=[
                pl.BlockSpec((tb, n_cate), lambda i: (i, 0)),   # shifted idx tile
                pl.BlockSpec((tb, n_num), lambda i: (i, 0)),    # narrow num tile
                pl.BlockSpec((k_pad, d_pad), lambda i: (0, 0)), # fused weight
            ],
            out_specs=pl.BlockSpec((tb, d_pad), lambda i: (i, 0)),
            scratch_shapes=[pltpu.VMEM((tb, k_pad), jnp.float32)],  # act slab
        ),
        compiler_params=pltpu.CompilerParams(
            dimension_semantics=("parallel",),
        ),
    )(sidx, num_f, w_fused)

    if not trim:
        return out_padded
    # Trim batch padding and lane padding (single XLA slice).
    return out_padded[:B, :d_out]


def reference_forward(idx, emb_tables, num_x, weight, bias):
    """Pure-JAX reference of the PyTorch forward."""
    B, n_cate = idx.shape
    embs = [emb_tables[f][idx[:, f]] for f in range(n_cate)]
    cat_part = jnp.concatenate(embs, axis=1)
    num_part = num_x @ weight.T + bias
    return jnp.concatenate([cat_part, num_part], axis=1)


if __name__ == "__main__":
    key = jax.random.PRNGKey(0)

    # Config consistent with the module: 3 categorical features (vocab sizes
    # 11, 7, 13), emb_dim = 5, 6 numerical features.
    emb_dim = 5
    vocab_sizes = [11, 7, 13]
    n_cate = len(vocab_sizes)
    n_num = 6
    v_max = max(vocab_sizes)

    k_emb, k_idx, k_num, k_w, k_b = jax.random.split(key, 5)

    # Deterministic parameter init (stand-in for nn.Embedding / nn.Linear init).
    emb_keys = jax.random.split(k_emb, n_cate)
    emb_tables = jnp.zeros((n_cate, v_max, emb_dim), jnp.float32)
    for f, vs in enumerate(vocab_sizes):
        tbl = jax.random.normal(emb_keys[f], (vs, emb_dim), jnp.float32)
        emb_tables = emb_tables.at[f, :vs, :].set(tbl)

    bound = 1.0 / (n_num ** 0.5)
    weight = jax.random.uniform(k_w, (n_num, n_num), jnp.float32, -bound, bound)
    bias = jax.random.uniform(k_b, (n_num,), jnp.float32, -bound, bound)

    def make_inputs(batch, k_i, k_n):
        cols = []
        ikeys = jax.random.split(k_i, n_cate)
        for f, vs in enumerate(vocab_sizes):
            cols.append(jax.random.randint(ikeys[f], (batch, 1), 0, vs, jnp.int32))
        return (jnp.concatenate(cols, axis=1),
                jax.random.normal(k_n, (batch, n_num), jnp.float32))

    # --- small single-tile check (B=8) ---
    idx8, num8 = make_inputs(8, k_idx, k_num)
    out8 = jax.block_until_ready(
        input_module_forward(idx8, emb_tables, num8, weight, bias))
    ref8 = reference_forward(idx8, emb_tables, num8, weight, bias)
    assert out8.shape == (8, n_cate * emb_dim + n_num)
    assert jnp.allclose(out8, ref8, atol=1e-5, rtol=1e-5)

    # --- multi-tile grid check with default tiling (B=200 -> 2 grid steps) ---
    k_idx2, k_num2 = jax.random.split(jax.random.PRNGKey(1), 2)
    idx200, num200 = make_inputs(200, k_idx2, k_num2)
    out200 = jax.block_until_ready(
        input_module_forward(idx200, emb_tables, num200, weight, bias))
    ref200 = reference_forward(idx200, emb_tables, num200, weight, bias)
    assert out200.shape == (200, n_cate * emb_dim + n_num)
    assert jnp.allclose(out200, ref200, atol=1e-5, rtol=1e-5)

    # --- multi-tile grid check with explicit small tile (B not tile-multiple) ---
    out200b = jax.block_until_ready(
        input_module_forward(idx200, emb_tables, num200, weight, bias,
                             batch_tile=64))
    assert jnp.allclose(out200b, ref200, atol=1e-5, rtol=1e-5)

    print("KERNEL_OK")
</pallas_src>

<mosaic_0001>
module attributes {stable_mosaic.version = 11 : i64} {
  func.func @_fused_input_kernel(%arg0: i32, %arg1: memref<8x3xi32, #tpu.memory_space<vmem>>, %arg2: memref<8x6xf32, #tpu.memory_space<vmem>>, %arg3: memref<128x128xf32, #tpu.memory_space<vmem>>, %arg4: memref<8x128xf32, #tpu.memory_space<vmem>>, %arg5: memref<8x128xf32, #tpu.memory_space<vmem>>) attributes {dimension_semantics = [#tpu.dimension_semantics<parallel>], iteration_bounds = array<i64: 1>, scalar_prefetch = 0 : i64, scratch_operands = 1 : i64, tpu.core_type = #tpu.core_type<tc>, window_params = [{transform_indices = @transform_0, window_bounds = array<i64: 8, 3>}, {transform_indices = @transform_1, window_bounds = array<i64: 8, 6>}, {pipeline_mode = #tpu.pipeline_mode<synchronous>, transform_indices = @transform_2, window_bounds = array<i64: 128, 128>}, {transform_indices = @transform_3, window_bounds = array<i64: 8, 128>}]} {
    %c0 = arith.constant 0 : index
    %c0_0 = arith.constant 0 : index
    %0 = vector.load %arg1[%c0, %c0_0] : memref<8x3xi32, #tpu.memory_space<vmem>>, vector<8x3xi32>
    %1 = tpu.iota {dimensions = array<i32: 1>} : vector<8x128xi32>
    %c6_i32 = arith.constant 6 : i32
    %2 = vector.broadcast %c6_i32 : i32 to vector<8x128xi32>
    %3 = arith.cmpi eq, %1, %2 : vector<8x128xi32>
    %4 = vector.extract_strided_slice %0 {offsets = [0, 0], sizes = [8, 1], strides = [1, 1]} : vector<8x3xi32> to vector<8x1xi32>
    %5 = vector.broadcast %4 : vector<8x1xi32> to vector<8x128xi32>
    %6 = arith.cmpi eq, %1, %5 : vector<8x128xi32>
    %7 = arith.ori %3, %6 : vector<8x128xi1>
    %8 = vector.extract_strided_slice %0 {offsets = [0, 1], sizes = [8, 1], strides = [1, 1]} : vector<8x3xi32> to vector<8x1xi32>
    %9 = vector.broadcast %8 : vector<8x1xi32> to vector<8x128xi32>
    %10 = arith.cmpi eq, %1, %9 : vector<8x128xi32>
    %11 = arith.ori %7, %10 : vector<8x128xi1>
    %12 = vector.extract_strided_slice %0 {offsets = [0, 2], sizes = [8, 1], strides = [1, 1]} : vector<8x3xi32> to vector<8x1xi32>
    %13 = vector.broadcast %12 : vector<8x1xi32> to vector<8x128xi32>
    %14 = arith.cmpi eq, %1, %13 : vector<8x128xi32>
    %15 = arith.ori %11, %14 : vector<8x128xi1>
    %16 = arith.extui %15 : vector<8x128xi1> to vector<8x128xi32>
    %17 = arith.sitofp %16 : vector<8x128xi32> to vector<8x128xf32>
    %c0_1 = arith.constant 0 : index
    %c0_2 = arith.constant 0 : index
    %18 = vector.load %arg5[%c0_1, %c0_2] : memref<8x128xf32, #tpu.memory_space<vmem>>, vector<8x128xf32>
    tpu.vector_store %arg5[%c0_1, %c0_2], %17 {strides = array<i32>} : memref<8x128xf32, #tpu.memory_space<vmem>>, vector<8x128xf32>,
    %c0_3 = arith.constant 0 : index
    %c0_4 = arith.constant 0 : index
    %19 = vector.load %arg2[%c0_3, %c0_4] : memref<8x6xf32, #tpu.memory_space<vmem>>, vector<8x6xf32>
    %c0_5 = arith.constant 0 : index
    %c0_6 = arith.constant 0 : index
    %20 = vector.load %arg5[%c0_5, %c0_6] : memref<8x128xf32, #tpu.memory_space<vmem>>, vector<8x6xf32>
    tpu.vector_store %arg5[%c0_5, %c0_6], %19 {strides = array<i32>} : memref<8x128xf32, #tpu.memory_space<vmem>>, vector<8x6xf32>,
    %c0_7 = arith.constant 0 : index
    %c0_8 = arith.constant 0 : index
    %21 = vector.load %arg5[%c0_7, %c0_8] : memref<8x128xf32, #tpu.memory_space<vmem>>, vector<8x128xf32>
    %c0_9 = arith.constant 0 : index
    %c0_10 = arith.constant 0 : index
    %22 = vector.load %arg3[%c0_9, %c0_10] : memref<128x128xf32, #tpu.memory_space<vmem>>, vector<128x128xf32>
    %cst = arith.constant dense<0.000000e+00> : vector<8x128xf32>
    %23 = tpu.matmul %21, %22, %cst {dimension_numbers = #tpu.dot_dimension_numbers<[1], [0], [0], [1], [0, 0, 1, 1], [], []>} : vector<8x128xf32>, vector<128x128xf32>, vector<8x128xf32> -> vector<8x128xf32>
    %c0_11 = arith.constant 0 : index
    %c0_12 = arith.constant 0 : index
    %24 = vector.load %arg4[%c0_11, %c0_12] : memref<8x128xf32, #tpu.memory_space<vmem>>, vector<8x128xf32>
    tpu.vector_store %arg4[%c0_11, %c0_12], %23 {strides = array<i32>} : memref<8x128xf32, #tpu.memory_space<vmem>>, vector<8x128xf32>,
    return
  }
  func.func @transform_0(%arg0: i32) -> (i32, i32) {
    %c0_i32 = arith.constant 0 : i32
    %c0_i32_0 = arith.constant 0 : i32
    return %arg0, %c0_i32 : i32, i32
  }
  func.func @transform_1(%arg0: i32) -> (i32, i32) {
    %c0_i32 = arith.constant 0 : i32
    %c0_i32_0 = arith.constant 0 : i32
    return %arg0, %c0_i32 : i32, i32
  }
  func.func @transform_2(%arg0: i32) -> (i32, i32) {
    %c0_i32 = arith.constant 0 : i32
    %c0_i32_0 = arith.constant 0 : i32
    %c0_i32_1 = arith.constant 0 : i32
    return %c0_i32, %c0_i32_0 : i32, i32
  }
  func.func @transform_3(%arg0: i32) -> (i32, i32) {
    %c0_i32 = arith.constant 0 : i32
    %c0_i32_0 = arith.constant 0 : i32
    return %arg0, %c0_i32 : i32, i32
  }
}

</mosaic_0001>

<bundles_post_ra>
// kernel: tpu_custom_call.1
= control target key start
LH: loop header
LB: loop body
LE: loop exit
PB: predicated region body
PF: predicated region fallthrough
CT: control target
= control target key end

     0   :  { %8 = vsyncpa [#allocation4], 0  ;;  %s216_s0 = inlined_call_operand.vmem [shape: s32[8,3], index: 0, kind: input, shape index: {}]   ;;  %s217_s1 = inlined_call_operand.vmem [shape: f32[8,6], index: 1, kind: input, shape index: {}]   ;;  %s218_s2 = inlined_call_operand.hbm [shape: f32[128,128], index: 2, kind: input, shape index: {}]   ;;  %s219_s3 = inlined_call_operand.hbm [shape: f32[8,128], index: 3, kind: output, shape index: {}]  }
   0x1   :  { %9 = vsyncpa [#allocation5], 0  ;;  %s18_s14 = sshll.u32 %s218_s2, 4  ;;  %s176_s15 = smov [#allocation3]   ;;  %s19_s14 = int_to_ptr.hbm [resolvable:$true] %s18_s14 }
   0x2   :  { %s20_s16 = sshll.u32 %s176_s15, 4  ;;  %s177_s17 = smov 128   ;;  %s21_s16 = int_to_ptr.vmem [resolvable:$true] %s20_s16 }
   0x3   :  { %s178_s18 = smov 8  }
   0x4   :  { %26 = dma.hbm_to_vmem [thread:$0]  %s19_s14, 2048, %s21_s16, [#allocation4], %s177_s17, %s177_s17, %s178_s18  }
   0x5   :  { %172 = dma.done.wait [#allocation4], 2048  }
   0x6   :  { %173 = vsyncadd [#allocation4], 4294965248  ;;  %v179_v0 = vmov 0   ;;  %v180_v1 = vmov 2   ;;  %v31_v2 = vld [vmem:[%s216_s0] sm:$0xff]  ;;  %v71_v4 = vld [vmem:[#allocation3 + $0x70] sm:$0xff]  ;;  %v32_v20 = vlaneseq }
   0x7   :  { %120 = vset.pattern.permute.xlu0 %v179_v0  ;;  %122 = vset.pattern.permute.xlu1 %v180_v1  ;;  %v72_v3 = vld [vmem:[#allocation3 + $0x78] sm:$0xff]  ;;  %v70_v5 = vld [vmem:[#allocation3 + $0x68] sm:$0xff]  ;;  %v69_v6 = vld [vmem:[#allocation3 + $0x60] sm:$0xff]  ;;  %v181_v8 = vmov 1   ;;  %vm54_vm6 = vcmask 48128   ;;  %v182_v26 = vmov 0.0  }
   0x8   :  { %36 = vperm.xlu0 %120, %v31_v2   ;;  %46 = vperm.xlu1 %122, %v31_v2   ;;  %v68_v7 = vld [vmem:[#allocation3 + $0x58] sm:$0xff]  ;;  %v67_v9 = vld [vmem:[#allocation3 + $0x50] sm:$0xff]  ;;  %v66_v10 = vld [vmem:[#allocation3 + $0x48] sm:$0xff]  ;;  %v33_v22 = vand.u32 127, %v32_v20  ;;  %s183_s21 = smov [#allocation6]   ;;  %s101_s25 = sshll.u32 %s219_s3, 4  ;;  %s102_s25 = int_to_ptr.hbm [resolvable:$true] %s101_s25 }
   0x9   :  { %73 = vmatpush.msra.mxu0 %v72_v3  ;;  %v65_v11 = vld [vmem:[#allocation3 + $0x40] sm:$0xff]  ;;  %v64_v12 = vld [vmem:[#allocation3 + $0x38] sm:$0xff]  ;;  %v63_v13 = vld [vmem:[#allocation3 + $0x30] sm:$0xff]  ;;  %s99_s22 = sshll.u32 %s183_s21, 4  ;;  %s100_s22 = int_to_ptr.vmem [resolvable:$true] %s99_s22 }
   0xa   :  { %v62_v14 = vld [vmem:[#allocation3 + $0x28] sm:$0xff]  ;;  %v61_v15 = vld [vmem:[#allocation3 + $0x20] sm:$0xff]  ;;  %v60_v16 = vld [vmem:[#allocation3 + $0x18] sm:$0xff]  ;;  %vm34_vm0 = vcmp.eq.s32.totalorder %v33_v22, 6 }
   0xb   :  { %74 = vmatpush.msra.mxu0 %v71_v4  ;;  %v59_v17 = vld [vmem:[#allocation3 + $0x10] sm:$0xff]  ;;  %v58_v18 = vld [vmem:[#allocation3 + $0x8] sm:$0xff]  ;;  %v57_v19 = vld [vmem:[#allocation3] sm:$0xff] }
   0xc   :  { %v53_v25 = vld [vmem:[%s217_s1] sm:$0xff] }
   0xd   :  { %75 = vmatpush.msra.mxu0 %v70_v5 }
   0xf   :  { %76 = vmatpush.msra.mxu0 %v69_v6 }
  0x10   :  { %121 = vset.pattern.permute.xlu0 %v181_v8 }
  0x11   :  { %41 = vperm.xlu0 %121, %v31_v2   ;;  %77 = vmatpush.msra.mxu0 %v68_v7 }
  0x13   :  { %78 = vmatpush.msra.mxu0 %v67_v9 }
  0x15   :  { %79 = vmatpush.msra.mxu0 %v66_v10 }
  0x17   :  { %80 = vmatpush.msra.mxu0 %v65_v11 }
  0x19   :  { %123 = vset.pattern.permute.xlu0 %v180_v1  ;;  %81 = vmatpush.msra.mxu0 %v64_v12 }
  0x1b   :  { %82 = vmatpush.msra.mxu0 %v63_v13 }
  0x1d   :  { %83 = vmatpush.msra.mxu0 %v62_v14 }
  0x1f   :  { %84 = vmatpush.msra.mxu0 %v61_v15 }
  0x21   :  { %85 = vmatpush.msra.mxu0 %v60_v16 }
  0x23   :  { %86 = vmatpush.msra.mxu0 %v59_v17 }
  0x25   :  { %87 = vmatpush.msra.mxu0 %v58_v18 }
  0x27   :  { %88 = vmatpush.msra.mxu0 %v57_v19 }
  0x7a   :  { %v37_v21 = vpop.permute.xlu0 %36  ;;  %v47_v23 = vpop.permute.xlu1 %46 }
  0x7b   :  { %vm38_vm1 = vcmp.eq.s32.totalorder %v33_v22, %v37_v21  ;;  %vm48_vm2 = vcmp.eq.s32.totalorder %v33_v22, %v47_v23 }
  0x7c   :  { %vm39_vm3 = vmor %vm34_vm0, %vm38_vm1 }
  0x83   :  { %v42_v24 = vpop.permute.xlu0 %41 }
  0x84   :  { %vm43_vm4 = vcmp.eq.s32.totalorder %v33_v22, %v42_v24 }
  0x85   :  { %vm44_vm5 = vmor %vm39_vm3, %vm43_vm4 }
  0x86   :  { %vm49_vm7 = vmor %vm44_vm5, %vm48_vm2 }
  0x87   :  { %v111_v27 = vsel %vm49_vm7, 1.0, %v182_v26 }
  0x88   :  { %52 = vst [vmem:[#allocation2] sm:$0xff] %v111_v27 }
  0x89   :  { %55 = vst.msk [vmem:[#allocation2] sm:$0xff] %vm54_vm6, %v53_v25 }
  0x90   :  { %v56_v28 = vld [vmem:[#allocation2] sm:$0xff] }
  0x91   :  { %89 = vmatmul.f32.vlgmr.msra.gmra.mxu0 %v56_v28 }
 0x10e   :  { %v90_v29 = vpop.f32.mrf.mxu0 }
 0x10f   :  { %93 = vst [vmem:[#allocation6] sm:$0xff] %v90_v29 }
 0x110   :  { %104 = dma.vmem_to_hbm [thread:$0]  %s100_s22, 128, %s102_s25, [#allocation5]  }
 0x111   :  { %174 = dma.done.wait [#allocation5], 128  }
 0x112   :  { %175 = vsyncadd [#allocation5], 4294967168 }
 0x113   :  { %109 = vsyncpa [#allocation4], 1 }
 0x114   :  { %110 = vsyncpa [#allocation5], 1 }

</bundles_post_ra>
